<compile_context>
chip_gen: v7x
topology: tpu7x:2x2x1
jax: 0.10.0
libtpu: 0.0.40
codegen_flags: <defaults>
</compile_context>

<pallas_src>
import jax
import jax.numpy as jnp
from jax.experimental import pallas as pl
from jax.experimental.pallas import tpu as pltpu


def _round_up(x, m):
    return ((x + m - 1) // m) * m


def actor_critic_forward(obs, actor_params, critic_params, *,
                         block_b=1024, compute_dtype=jnp.float32):
    """Pallas equivalent of actor_critic.forward(obs) -> Q1 (shape (B, 1), f32)."""
    aw1, ab1, aw2, ab2, aw3, ab3 = actor_params
    cw1, cb1, cw2, cb2, cw3, cb3 = critic_params

    B, obs_dim = obs.shape
    hidden = aw1.shape[1]
    act_dim = aw3.shape[1]
    cdt = jnp.dtype(compute_dtype)
    f32 = jnp.float32

    # ---- one-time (tiny) weight prep: transpose, fuse, cast MXU inputs ----
    # Fused first layer: [actor W1 ; critic W1 (obs rows)]  ->  (2*hidden, obs_dim)
    w1f = jnp.concatenate([aw1, cw1[:obs_dim]], axis=1).T.astype(cdt)
    aw2T = aw2.T.astype(cdt)                       # (hidden, hidden)
    aw3T = aw3.T.astype(cdt)                       # (act_dim, hidden)
    cw1aT = cw1[obs_dim:].T.astype(cdt)            # (hidden, act_dim)  -- action part of cat
    cw2T = cw2.T.astype(cdt)                       # (hidden, hidden)
    # Biases as (D_out, 1) columns, kept f32 (elementwise path stays f32 on all chips).
    ab1c, ab2c, ab3c = ab1.T, ab2.T, ab3.T
    cb1c, cb2c = cb1.T, cb2.T
    cw3c = cw3.astype(f32)                         # (hidden, 1) -- used on the VPU, not MXU
    cb3c = cb3.T                                   # (1, 1)

    # Lane-major batch: (obs_dim, B).  This transpose is the only wrapper-side data copy.
    obsT = obs.T.astype(cdt)

    # ---- batch tiling: lane tiles (multiples of 128), >=2 grid steps when possible ----
    block_b = max(128, _round_up(int(block_b), 128))
    tb = min(block_b, _round_up(B, 128))
    if B >= 256:
        # Cap so the batch axis splits into >= 2 grid steps (megacore on v7x; no-op on
        # single-TC v5e/v6e).
        tb = min(tb, _round_up((B + 1) // 2, 128))
    tb = max(tb, 128)
    b_pad = _round_up(B, tb)
    grid_b = b_pad // tb
    mask_tail = (b_pad != B)   # last tile overhangs B -> zero-mask garbage lanes in-kernel

    def kernel(xT_ref,
               w1f_ref, ab1_ref, aw2_ref, ab2_ref, aw3_ref, ab3_ref,
               cw1a_ref, cb1_ref, cw2_ref, cb2_ref, cw3_ref, cb3_ref,
               q1_ref):
        x = xT_ref[...]                                             # (obs_dim, tb)
        if mask_tail:
            lane = jax.lax.broadcasted_iota(jnp.int32, x.shape, 1)
            valid = (pl.program_id(0) * tb + lane) < B
            x = jnp.where(valid, x, jnp.zeros_like(x))

        # Fused first layer: one MXU pass over x gives both actor-L1 and critic-L1(obs).
        h = jnp.dot(w1f_ref[...], x, preferred_element_type=f32)    # (2*hidden, tb) f32
        h1 = jnp.maximum(h[:hidden] + ab1_ref[...], 0.0)            # actor hidden 1
        q_obs = h[hidden:]                                          # critic obs-side pre-act

        # Actor: hidden -> hidden -> act_dim (tanh), feature-major, batch on lanes.
        h2 = jnp.dot(aw2_ref[...], h1.astype(cdt),
                     preferred_element_type=f32) + ab2_ref[...]
        h2 = jnp.maximum(h2, 0.0)
        a = jnp.tanh(jnp.dot(aw3_ref[...], h2.astype(cdt),
                             preferred_element_type=f32) + ab3_ref[...])

        # Critic Q1 on cat(obs, a): split-weight matmuls == concat @ Wc1.
        q = q_obs + jnp.dot(cw1a_ref[...], a.astype(cdt),
                            preferred_element_type=f32) + cb1_ref[...]
        q = jnp.maximum(q, 0.0)
        q = jnp.dot(cw2_ref[...], q.astype(cdt),
                    preferred_element_type=f32) + cb2_ref[...]
        q = jnp.maximum(q, 0.0)

        # Final (hidden -> 1) head: VPU multiply + sublane (XLU) reduce — no N=1 MXU pass.
        q1 = jnp.sum(q * cw3_ref[...], axis=0, keepdims=True) + cb3_ref[...]   # (1, tb)
        q1_ref[...] = q1.astype(q1_ref.dtype)

    # Weights/biases use a constant index_map: DMA'd once, VMEM-resident across grid steps.
    resident = lambda w: pl.BlockSpec(w.shape, lambda i: (0, 0))

    flops = int(2 * B * (obs_dim * 2 * hidden + hidden * hidden + hidden * act_dim
                         + act_dim * hidden + hidden * hidden + hidden))
    transcendentals = int(B * act_dim)
    weight_arrays = (w1f, aw2T, aw3T, cw1aT, cw2T, ab1c, ab2c, ab3c,
                     cb1c, cb2c, cw3c, cb3c)
    bytes_accessed = int(obsT.size) * int(obsT.dtype.itemsize)
    bytes_accessed += sum(int(w.size) * int(w.dtype.itemsize) for w in weight_arrays)
    bytes_accessed += int(b_pad) * 4

    q1T = pl.pallas_call(
        kernel,
        out_shape=jax.ShapeDtypeStruct((1, b_pad), f32),
        grid=(grid_b,),
        in_specs=[
            pl.BlockSpec((obs_dim, tb), lambda i: (0, i)),
            resident(w1f), resident(ab1c),
            resident(aw2T), resident(ab2c),
            resident(aw3T), resident(ab3c),
            resident(cw1aT), resident(cb1c),
            resident(cw2T), resident(cb2c),
            resident(cw3c), resident(cb3c),
        ],
        out_specs=pl.BlockSpec((1, tb), lambda i: (0, i)),   # lane-dense Q1 row
        compiler_params=pltpu.CompilerParams(
            dimension_semantics=("parallel",),               # shard batch across v7x's 2 TCs
        ),
        cost_estimate=pl.CostEstimate(flops=flops,
                                      transcendentals=transcendentals,
                                      bytes_accessed=bytes_accessed),
    )(obsT, w1f, ab1c, aw2T, ab2c, aw3T, ab3c,
      cw1aT, cb1c, cw2T, cb2c, cw3c, cb3c)

    return q1T[0, :B].reshape(B, 1)


def init_params(key, obs_dim, hidden, act_dim):
    """Deterministic synthetic parameters (torch Linear-style uniform init).

    Linear weights stored as [D_in, D_out] (torch weight.T), biases as [1, D_out].
    """
    ks = jax.random.split(key, 12)

    def lin(kw, kb, fan_in, fan_out):
        bound = 1.0 / jnp.sqrt(fan_in)
        w = jax.random.uniform(kw, (fan_in, fan_out), jnp.float32, -bound, bound)
        b = jax.random.uniform(kb, (1, fan_out), jnp.float32, -bound, bound)
        return w, b

    # actor: obs -> hidden -> hidden -> act (tanh)
    aw1, ab1 = lin(ks[0], ks[1], obs_dim, hidden)
    aw2, ab2 = lin(ks[2], ks[3], hidden, hidden)
    aw3, ab3 = lin(ks[4], ks[5], hidden, act_dim)
    # critic Q1 head: (obs+act) -> hidden -> hidden -> 1
    cw1, cb1 = lin(ks[6], ks[7], obs_dim + act_dim, hidden)
    cw2, cb2 = lin(ks[8], ks[9], hidden, hidden)
    cw3, cb3 = lin(ks[10], ks[11], hidden, 1)
    return (aw1, ab1, aw2, ab2, aw3, ab3), (cw1, cb1, cw2, cb2, cw3, cb3)


def _ref_forward(obs, actor_params, critic_params):
    aw1, ab1, aw2, ab2, aw3, ab3 = actor_params
    cw1, cb1, cw2, cb2, cw3, cb3 = critic_params
    h = jnp.maximum(obs @ aw1 + ab1, 0.0)
    h = jnp.maximum(h @ aw2 + ab2, 0.0)
    a = jnp.tanh(h @ aw3 + ab3)
    x = jnp.concatenate([obs, a], axis=-1)
    q = jnp.maximum(x @ cw1 + cb1, 0.0)
    q = jnp.maximum(q @ cw2 + cb2, 0.0)
    return q @ cw3 + cb3


if __name__ == "__main__":
    B, OBS_DIM, HIDDEN, ACT_DIM = 2, 16, 32, 4

    key = jax.random.PRNGKey(0)
    k_obs, k_par, k_big = jax.random.split(key, 3)
    obs = jax.random.normal(k_obs, (B, OBS_DIM), dtype=jnp.float32)
    actor_params, critic_params = init_params(k_par, OBS_DIM, HIDDEN, ACT_DIM)

    # Small-shape check (typical single/few-obs call); exercises the B < tile path.
    q1 = jax.block_until_ready(actor_critic_forward(obs, actor_params, critic_params))
    ref = _ref_forward(obs, actor_params, critic_params)
    assert q1.shape == (B, 1)
    assert jnp.allclose(q1, ref, atol=1e-5, rtol=1e-5)

    # Larger, non-tile-multiple batch: exercises the >=2-step grid + in-kernel tail mask.
    B_big = 300
    obs_big = jax.random.normal(k_big, (B_big, OBS_DIM), dtype=jnp.float32)
    q1_big = jax.block_until_ready(
        actor_critic_forward(obs_big, actor_params, critic_params))
    ref_big = _ref_forward(obs_big, actor_params, critic_params)
    assert q1_big.shape == (B_big, 1)
    assert jnp.allclose(q1_big, ref_big, atol=1e-5, rtol=1e-5)

    # bf16 MXU inputs / f32 accumulation (v6e/v7x mixed-precision path), loose tolerance.
    q1_bf16 = jax.block_until_ready(
        actor_critic_forward(obs_big, actor_params, critic_params,
                             compute_dtype=jnp.bfloat16))
    assert q1_bf16.shape == (B_big, 1)
    assert jnp.allclose(q1_bf16, ref_big, atol=5e-2, rtol=5e-2)

    print("KERNEL_OK")
</pallas_src>

<mosaic_0001>
module attributes {stable_mosaic.version = 11 : i64} {
  func.func @kernel(%arg0: i32, %arg1: memref<16x128xf32, #tpu.memory_space<vmem>>, %arg2: memref<64x16xf32, #tpu.memory_space<vmem>>, %arg3: memref<32x1xf32, #tpu.memory_space<vmem>>, %arg4: memref<32x32xf32, #tpu.memory_space<vmem>>, %arg5: memref<32x1xf32, #tpu.memory_space<vmem>>, %arg6: memref<4x32xf32, #tpu.memory_space<vmem>>, %arg7: memref<4x1xf32, #tpu.memory_space<vmem>>, %arg8: memref<32x4xf32, #tpu.memory_space<vmem>>, %arg9: memref<32x1xf32, #tpu.memory_space<vmem>>, %arg10: memref<32x32xf32, #tpu.memory_space<vmem>>, %arg11: memref<32x1xf32, #tpu.memory_space<vmem>>, %arg12: memref<32x1xf32, #tpu.memory_space<vmem>>, %arg13: memref<1x1xf32, #tpu.memory_space<vmem>>, %arg14: memref<1x128xf32, #tpu.memory_space<vmem>>) attributes {dimension_semantics = [#tpu.dimension_semantics<parallel>], iteration_bounds = array<i64: 1>, scalar_prefetch = 0 : i64, scratch_operands = 0 : i64, tpu.core_type = #tpu.core_type<tc>, window_params = [{transform_indices = @transform_0, window_bounds = array<i64: 16, 128>}, {pipeline_mode = #tpu.pipeline_mode<synchronous>, transform_indices = @transform_1, window_bounds = array<i64: 64, 16>}, {pipeline_mode = #tpu.pipeline_mode<synchronous>, transform_indices = @transform_2, window_bounds = array<i64: 32, 1>}, {pipeline_mode = #tpu.pipeline_mode<synchronous>, transform_indices = @transform_3, window_bounds = array<i64: 32, 32>}, {pipeline_mode = #tpu.pipeline_mode<synchronous>, transform_indices = @transform_4, window_bounds = array<i64: 32, 1>}, {pipeline_mode = #tpu.pipeline_mode<synchronous>, transform_indices = @transform_5, window_bounds = array<i64: 4, 32>}, {pipeline_mode = #tpu.pipeline_mode<synchronous>, transform_indices = @transform_6, window_bounds = array<i64: 4, 1>}, {pipeline_mode = #tpu.pipeline_mode<synchronous>, transform_indices = @transform_7, window_bounds = array<i64: 32, 4>}, {pipeline_mode = #tpu.pipeline_mode<synchronous>, transform_indices = @transform_8, window_bounds = array<i64: 32, 1>}, {pipeline_mode = #tpu.pipeline_mode<synchronous>, transform_indices = @transform_9, window_bounds = array<i64: 32, 32>}, {pipeline_mode = #tpu.pipeline_mode<synchronous>, transform_indices = @transform_10, window_bounds = array<i64: 32, 1>}, {pipeline_mode = #tpu.pipeline_mode<synchronous>, transform_indices = @transform_11, window_bounds = array<i64: 32, 1>}, {pipeline_mode = #tpu.pipeline_mode<synchronous>, transform_indices = @transform_12, window_bounds = array<i64: 1, 1>}, {transform_indices = @transform_13, window_bounds = array<i64: 1, 128>}]} {
    %c0 = arith.constant 0 : index
    %c0_0 = arith.constant 0 : index
    %0 = vector.load %arg1[%c0, %c0_0] : memref<16x128xf32, #tpu.memory_space<vmem>>, vector<16x128xf32>
    %1 = tpu.iota {dimensions = array<i32: 1>} : vector<16x128xi32>
    %c128_i32 = arith.constant 128 : i32
    %2 = arith.muli %arg0, %c128_i32 : i32
    %3 = vector.broadcast %2 : i32 to vector<16x128xi32>
    %4 = arith.addi %3, %1 : vector<16x128xi32>
    %c2_i32 = arith.constant 2 : i32
    %5 = vector.broadcast %c2_i32 : i32 to vector<16x128xi32>
    %6 = arith.cmpi slt, %4, %5 : vector<16x128xi32>
    %cst = arith.constant 0.000000e+00 : f32
    %7 = vector.broadcast %cst : f32 to vector<16x128xf32>
    %8 = arith.select %6, %0, %7 : vector<16x128xi1>, vector<16x128xf32>
    %c0_1 = arith.constant 0 : index
    %c0_2 = arith.constant 0 : index
    %9 = vector.load %arg2[%c0_1, %c0_2] : memref<64x16xf32, #tpu.memory_space<vmem>>, vector<64x16xf32>
    %cst_3 = arith.constant dense<0.000000e+00> : vector<64x128xf32>
    %10 = tpu.matmul %9, %8, %cst_3 {dimension_numbers = #tpu.dot_dimension_numbers<[1], [0], [0], [1], [0, 0, 1, 1], [], []>} : vector<64x16xf32>, vector<16x128xf32>, vector<64x128xf32> -> vector<64x128xf32>
    %11 = vector.extract_strided_slice %10 {offsets = [0, 0], sizes = [32, 128], strides = [1, 1]} : vector<64x128xf32> to vector<32x128xf32>
    %c0_4 = arith.constant 0 : index
    %c0_5 = arith.constant 0 : index
    %12 = vector.load %arg3[%c0_4, %c0_5] : memref<32x1xf32, #tpu.memory_space<vmem>>, vector<32x1xf32>
    %13 = vector.broadcast %12 : vector<32x1xf32> to vector<32x128xf32>
    %14 = arith.addf %11, %13 : vector<32x128xf32>
    %cst_6 = arith.constant 0.000000e+00 : f32
    %15 = vector.broadcast %cst_6 : f32 to vector<32x128xf32>
    %16 = arith.maximumf %14, %15 : vector<32x128xf32>
    %17 = vector.extract_strided_slice %10 {offsets = [32, 0], sizes = [32, 128], strides = [1, 1]} : vector<64x128xf32> to vector<32x128xf32>
    %c0_7 = arith.constant 0 : index
    %c0_8 = arith.constant 0 : index
    %18 = vector.load %arg4[%c0_7, %c0_8] : memref<32x32xf32, #tpu.memory_space<vmem>>, vector<32x32xf32>
    %cst_9 = arith.constant dense<0.000000e+00> : vector<32x128xf32>
    %19 = tpu.matmul %18, %16, %cst_9 {dimension_numbers = #tpu.dot_dimension_numbers<[1], [0], [0], [1], [0, 0, 1, 1], [], []>} : vector<32x32xf32>, vector<32x128xf32>, vector<32x128xf32> -> vector<32x128xf32>
    %c0_10 = arith.constant 0 : index
    %c0_11 = arith.constant 0 : index
    %20 = vector.load %arg5[%c0_10, %c0_11] : memref<32x1xf32, #tpu.memory_space<vmem>>, vector<32x1xf32>
    %21 = vector.broadcast %20 : vector<32x1xf32> to vector<32x128xf32>
    %22 = arith.addf %19, %21 : vector<32x128xf32>
    %cst_12 = arith.constant 0.000000e+00 : f32
    %23 = vector.broadcast %cst_12 : f32 to vector<32x128xf32>
    %24 = arith.maximumf %22, %23 : vector<32x128xf32>
    %c0_13 = arith.constant 0 : index
    %c0_14 = arith.constant 0 : index
    %25 = vector.load %arg6[%c0_13, %c0_14] : memref<4x32xf32, #tpu.memory_space<vmem>>, vector<4x32xf32>
    %cst_15 = arith.constant dense<0.000000e+00> : vector<4x128xf32>
    %26 = tpu.matmul %25, %24, %cst_15 {dimension_numbers = #tpu.dot_dimension_numbers<[1], [0], [0], [1], [0, 0, 1, 1], [], []>} : vector<4x32xf32>, vector<32x128xf32>, vector<4x128xf32> -> vector<4x128xf32>
    %c0_16 = arith.constant 0 : index
    %c0_17 = arith.constant 0 : index
    %27 = vector.load %arg7[%c0_16, %c0_17] : memref<4x1xf32, #tpu.memory_space<vmem>>, vector<4x1xf32>
    %28 = vector.broadcast %27 : vector<4x1xf32> to vector<4x128xf32>
    %29 = arith.addf %26, %28 : vector<4x128xf32>
    %30 = math.tanh %29 : vector<4x128xf32>
    %c0_18 = arith.constant 0 : index
    %c0_19 = arith.constant 0 : index
    %31 = vector.load %arg8[%c0_18, %c0_19] : memref<32x4xf32, #tpu.memory_space<vmem>>, vector<32x4xf32>
    %cst_20 = arith.constant dense<0.000000e+00> : vector<32x128xf32>
    %32 = tpu.matmul %31, %30, %cst_20 {dimension_numbers = #tpu.dot_dimension_numbers<[1], [0], [0], [1], [0, 0, 1, 1], [], []>} : vector<32x4xf32>, vector<4x128xf32>, vector<32x128xf32> -> vector<32x128xf32>
    %33 = arith.addf %17, %32 : vector<32x128xf32>
    %c0_21 = arith.constant 0 : index
    %c0_22 = arith.constant 0 : index
    %34 = vector.load %arg9[%c0_21, %c0_22] : memref<32x1xf32, #tpu.memory_space<vmem>>, vector<32x1xf32>
    %35 = vector.broadcast %34 : vector<32x1xf32> to vector<32x128xf32>
    %36 = arith.addf %33, %35 : vector<32x128xf32>
    %cst_23 = arith.constant 0.000000e+00 : f32
    %37 = vector.broadcast %cst_23 : f32 to vector<32x128xf32>
    %38 = arith.maximumf %36, %37 : vector<32x128xf32>
    %c0_24 = arith.constant 0 : index
    %c0_25 = arith.constant 0 : index
    %39 = vector.load %arg10[%c0_24, %c0_25] : memref<32x32xf32, #tpu.memory_space<vmem>>, vector<32x32xf32>
    %cst_26 = arith.constant dense<0.000000e+00> : vector<32x128xf32>
    %40 = tpu.matmul %39, %38, %cst_26 {dimension_numbers = #tpu.dot_dimension_numbers<[1], [0], [0], [1], [0, 0, 1, 1], [], []>} : vector<32x32xf32>, vector<32x128xf32>, vector<32x128xf32> -> vector<32x128xf32>
    %c0_27 = arith.constant 0 : index
    %c0_28 = arith.constant 0 : index
    %41 = vector.load %arg11[%c0_27, %c0_28] : memref<32x1xf32, #tpu.memory_space<vmem>>, vector<32x1xf32>
    %42 = vector.broadcast %41 : vector<32x1xf32> to vector<32x128xf32>
    %43 = arith.addf %40, %42 : vector<32x128xf32>
    %cst_29 = arith.constant 0.000000e+00 : f32
    %44 = vector.broadcast %cst_29 : f32 to vector<32x128xf32>
    %45 = arith.maximumf %43, %44 : vector<32x128xf32>
    %c0_30 = arith.constant 0 : index
    %c0_31 = arith.constant 0 : index
    %46 = vector.load %arg12[%c0_30, %c0_31] : memref<32x1xf32, #tpu.memory_space<vmem>>, vector<32x1xf32>
    %47 = vector.broadcast %46 : vector<32x1xf32> to vector<32x128xf32>
    %48 = arith.mulf %45, %47 : vector<32x128xf32>
    %cst_32 = arith.constant dense<0.000000e+00> : vector<128xf32>
    %49 = vector.multi_reduction <add>, %48, %cst_32 [0] : vector<32x128xf32> to vector<128xf32>
    %50 = vector.shape_cast %49 : vector<128xf32> to vector<1x128xf32>
    %c0_33 = arith.constant 0 : index
    %c0_34 = arith.constant 0 : index
    %51 = vector.load %arg13[%c0_33, %c0_34] : memref<1x1xf32, #tpu.memory_space<vmem>>, vector<1x1xf32>
    %52 = vector.broadcast %51 : vector<1x1xf32> to vector<1x128xf32>
    %53 = arith.addf %50, %52 : vector<1x128xf32>
    %c0_35 = arith.constant 0 : index
    %c0_36 = arith.constant 0 : index
    %54 = vector.load %arg14[%c0_35, %c0_36] : memref<1x128xf32, #tpu.memory_space<vmem>>, vector<1x128xf32>
    tpu.vector_store %arg14[%c0_35, %c0_36], %53 {strides = array<i32>} : memref<1x128xf32, #tpu.memory_space<vmem>>, vector<1x128xf32>,
    return
  }
  func.func @transform_0(%arg0: i32) -> (i32, i32) {
    %c0_i32 = arith.constant 0 : i32
    %c0_i32_0 = arith.constant 0 : i32
    return %c0_i32, %arg0 : i32, i32
  }
  func.func @transform_1(%arg0: i32) -> (i32, i32) {
    %c0_i32 = arith.constant 0 : i32
    %c0_i32_0 = arith.constant 0 : i32
    %c0_i32_1 = arith.constant 0 : i32
    return %c0_i32, %c0_i32_0 : i32, i32
  }
  func.func @transform_2(%arg0: i32) -> (i32, i32) {
    %c0_i32 = arith.constant 0 : i32
    %c0_i32_0 = arith.constant 0 : i32
    %c0_i32_1 = arith.constant 0 : i32
    return %c0_i32, %c0_i32_0 : i32, i32
  }
  func.func @transform_3(%arg0: i32) -> (i32, i32) {
    %c0_i32 = arith.constant 0 : i32
    %c0_i32_0 = arith.constant 0 : i32
    %c0_i32_1 = arith.constant 0 : i32
    return %c0_i32, %c0_i32_0 : i32, i32
  }
  func.func @transform_4(%arg0: i32) -> (i32, i32) {
    %c0_i32 = arith.constant 0 : i32
    %c0_i32_0 = arith.constant 0 : i32
    %c0_i32_1 = arith.constant 0 : i32
    return %c0_i32, %c0_i32_0 : i32, i32
  }
  func.func @transform_5(%arg0: i32) -> (i32, i32) {
    %c0_i32 = arith.constant 0 : i32
    %c0_i32_0 = arith.constant 0 : i32
    %c0_i32_1 = arith.constant 0 : i32
    return %c0_i32, %c0_i32_0 : i32, i32
  }
  func.func @transform_6(%arg0: i32) -> (i32, i32) {
    %c0_i32 = arith.constant 0 : i32
    %c0_i32_0 = arith.constant 0 : i32
    %c0_i32_1 = arith.constant 0 : i32
    return %c0_i32, %c0_i32_0 : i32, i32
  }
  func.func @transform_7(%arg0: i32) -> (i32, i32) {
    %c0_i32 = arith.constant 0 : i32
    %c0_i32_0 = arith.constant 0 : i32
    %c0_i32_1 = arith.constant 0 : i32
    return %c0_i32, %c0_i32_0 : i32, i32
  }
  func.func @transform_8(%arg0: i32) -> (i32, i32) {
    %c0_i32 = arith.constant 0 : i32
    %c0_i32_0 = arith.constant 0 : i32
    %c0_i32_1 = arith.constant 0 : i32
    return %c0_i32, %c0_i32_0 : i32, i32
  }
  func.func @transform_9(%arg0: i32) -> (i32, i32) {
    %c0_i32 = arith.constant 0 : i32
    %c0_i32_0 = arith.constant 0 : i32
    %c0_i32_1 = arith.constant 0 : i32
    return %c0_i32, %c0_i32_0 : i32, i32
  }
  func.func @transform_10(%arg0: i32) -> (i32, i32) {
    %c0_i32 = arith.constant 0 : i32
    %c0_i32_0 = arith.constant 0 : i32
    %c0_i32_1 = arith.constant 0 : i32
    return %c0_i32, %c0_i32_0 : i32, i32
  }
  func.func @transform_11(%arg0: i32) -> (i32, i32) {
    %c0_i32 = arith.constant 0 : i32
    %c0_i32_0 = arith.constant 0 : i32
    %c0_i32_1 = arith.constant 0 : i32
    return %c0_i32, %c0_i32_0 : i32, i32
  }
  func.func @transform_12(%arg0: i32) -> (i32, i32) {
    %c0_i32 = arith.constant 0 : i32
    %c0_i32_0 = arith.constant 0 : i32
    %c0_i32_1 = arith.constant 0 : i32
    return %c0_i32, %c0_i32_0 : i32, i32
  }
  func.func @transform_13(%arg0: i32) -> (i32, i32) {
    %c0_i32 = arith.constant 0 : i32
    %c0_i32_0 = arith.constant 0 : i32
    return %c0_i32, %arg0 : i32, i32
  }
}

</mosaic_0001>

<bundles_post_ra>
// kernel: tpu_custom_call.1
= control target key start
LH: loop header
LB: loop body
LE: loop exit
PB: predicated region body
PF: predicated region fallthrough
CT: control target
= control target key end

     0   :  { %s1205_s0 = inlined_call_operand.vmem [shape: f32[16,2], index: 0, kind: input, shape index: {}]   ;;  %s1206_s1 = inlined_call_operand.vmem [shape: f32[64,16], index: 1, kind: input, shape index: {}]   ;;  %s1207_s2 = inlined_call_operand.vmem [shape: f32[32,1], index: 2, kind: input, shape index: {}]   ;;  %s1208_s3 = inlined_call_operand.vmem [shape: f32[32,32], index: 3, kind: input, shape index: {}]   ;;  %s1209_s4 = inlined_call_operand.vmem [shape: f32[32,1], index: 4, kind: input, shape index: {}]   ;;  %s1210_s5 = inlined_call_operand.vmem [shape: f32[4,32], index: 5, kind: input, shape index: {}]   ;;  %s1211_s6 = inlined_call_operand.vmem [shape: f32[4,1], index: 6, kind: input, shape index: {}]   ;;  %s1212_s7 = inlined_call_operand.vmem [shape: f32[32,4], index: 7, kind: input, shape index: {}]   ;;  %s1213_s8 = inlined_call_operand.vmem [shape: f32[32,1], index: 8, kind: input, shape index: {}]   ;;  %s1214_s9 = inlined_call_operand.vmem [shape: f32[32,32], index: 9, kind: input, shape index: {}]   ;;  %s1215_s10 = inlined_call_operand.vmem [shape: f32[32,1], index: 10, kind: input, shape index: {}]   ;;  %s1216_s11 = inlined_call_operand.vmem [shape: f32[32,1], index: 11, kind: input, shape index: {}]   ;;  %s1217_s12 = inlined_call_operand.<no memory space> [shape: f32[1,1], index: 12, kind: input, shape index: {}]   ;;  %s1218_s13 = inlined_call_operand.hbm [shape: f32[1,128], index: 13, kind: output, shape index: {}]  }
   0x1   :  { %v18_v0 = vstv %s1217_s12 }
   0x2   :  { %19 = vst [vmem:[#allocation2] sm:$0x1] %v18_v0 }
   0x3   :  { %v47_v1 = vld [vmem:[%s1205_s0] sm:$0xff]  ;;  %v48_v2 = vld [vmem:[%s1205_s0 + $0x8] sm:$0xff]  ;;  %v49_v3 = vlaneseq  ;;  %vm65_vm0 = vcmask 130048   ;;  %v960_v5 = vmov 0   ;;  %v197_v9 = vld [vmem:[%s1207_s2 + $0x10] sm:$0xff] }
   0x4   :  { %v57_v4 = vld [vmem:[%s1206_s1] sm:$0xff]  ;;  %932 = vset.pattern.permute.xlu0 %v960_v5  ;;  %v895_v7 = vpack.c.bf16 %v48_v2, %v47_v1  ;;  %933 = vset.pattern.permute.xlu1 %v960_v5  ;;  %v196_v10 = vld [vmem:[%s1207_s2 + $0x8] sm:$0xff]  ;;  %v198_v11 = vld [vmem:[%s1207_s2 + $0x18] sm:$0xff] }
   0x5   :  { %836 = vmatprep.mubr.msk.f32.mxu0 %vm65_vm0, %v57_v4  ;;  %v50_v6 = vand.u32 127, %v49_v3  ;;  %v195_v8 = vld [vmem:[%s1207_s2] sm:$0xff]  ;;  %211 = vperm.xlu1 %933, %v197_v9   ;;  %v58_v12 = vld [vmem:[%s1206_s1 + $0x8] sm:$0xff]  ;;  %v59_v13 = vld [vmem:[%s1206_s1 + $0x10] sm:$0xff] }
   0x6   :  { %201 = vperm.xlu0 %932, %v195_v8   ;;  %v231_v14 = vld [vmem:[%s1209_s4] sm:$0xff]  ;;  %v232_v15 = vld [vmem:[%s1209_s4 + $0x8] sm:$0xff] }
   0x7   :  { %vm54_vm1 = vcmp.lt.s32.totalorder %v50_v6, 2 }
   0x8   :  { %vm896_vm2 = vmpackc.low %vm54_vm1, %vm54_vm1 }
   0x9   :  { %897 = vmatprep.subr.msk.bf16.mxu0 %vm896_vm2, %v895_v7  ;;  %216 = vperm.xlu1 %933, %v198_v11  }
   0xa   :  { %900 = vmatpush3.bf16.msk.msra.mxu0 %vm896_vm2, %v895_v7  ;;  %206 = vperm.xlu0 %932, %v196_v10  }
   0xb   :  { %20 = vsyncpa [#allocation4], 0  ;;  %v60_v16 = vld [vmem:[%s1206_s1 + $0x18] sm:$0xff]  ;;  %v233_v17 = vld [vmem:[%s1209_s4 + $0x10] sm:$0xff]  ;;  %vm255_vm3 = vcmask 261120   ;;  %v961_v55 = vmov 0.0|0.0  }
   0xc   :  { %v234_v18 = vld [vmem:[%s1209_s4 + $0x18] sm:$0xff]  ;;  %v358_v19 = vld [vmem:[%s1211_s6] sm:$0xf]  ;;  %v549_v21 = vld [vmem:[%s1213_s8 + $0x8] sm:$0xff]  ;;  %vm962_vm4 = vmmov 0   ;;  %v963_v56 = vmov 0.0  }
   0xd   :  { %837 = vmatmul.mubr.msk.f32.vlgmr.msra.gmra.mrb[0].mxu0 %vm65_vm0, %v58_v12  ;;  %242 = vperm.xlu1 %933, %v232_v15   ;;  %v548_v20 = vld [vmem:[%s1213_s8] sm:$0xff]  ;;  %v550_v22 = vld [vmem:[%s1213_s8 + $0x10] sm:$0xff]  ;;  %v551_v23 = vld [vmem:[%s1213_s8 + $0x18] sm:$0xff]  ;;  %vm442_vm5 = vcmask 31744   ;;  %vm455_vm6 = vcmask 1043456  }
   0xe   :  { %839 = vmatprep.mubr.msk.f32.mxu0 %vm65_vm0, %v59_v13  ;;  %237 = vperm.xlu0 %932, %v231_v14   ;;  %v584_v24 = vld [vmem:[%s1215_s10] sm:$0xff]  ;;  %v585_v25 = vld [vmem:[%s1215_s10 + $0x8] sm:$0xff]  ;;  %v586_v26 = vld [vmem:[%s1215_s10 + $0x10] sm:$0xff] }
   0xf   :  { %v587_v27 = vld [vmem:[%s1215_s10 + $0x18] sm:$0xff]  ;;  %v709_v28 = vld [vmem:[%s1216_s11] sm:$0xff]  ;;  %v710_v29 = vld [vmem:[%s1216_s11 + $0x8] sm:$0xff] }
  0x10   :  { %v711_v30 = vld [vmem:[%s1216_s11 + $0x10] sm:$0xff]  ;;  %v712_v31 = vld [vmem:[%s1216_s11 + $0x18] sm:$0xff]  ;;  %v746_v32 = vld [vmem:[#allocation2] sm:$0x1] }
  0x11   :  { %840 = vmatmul.mubr.msk.f32.gmra.mrb[2].mxu0 %vm65_vm0, %v60_v16  ;;  %252 = vperm.xlu1 %933, %v234_v18   ;;  %v227_v33 = vld [vmem:[%s1208_s3] sm:$0xff]  ;;  %v228_v52 = vld [vmem:[%s1208_s3 + $0x8] sm:$0xff]  ;;  %v229_v53 = vld [vmem:[%s1208_s3 + $0x10] sm:$0xff] }
  0x12   :  { %247 = vperm.xlu0 %932, %v233_v17   ;;  %856 = vmatprep.mubr.msk.f32.mxu1 %vm255_vm3, %v227_v33  ;;  %v230_v54 = vld [vmem:[%s1208_s3 + $0x18] sm:$0xff]  ;;  %v357_v12 = vld [vmem:[%s1210_s5] sm:$0xf]  ;;  %v62_v14 = vld [vmem:[%s1206_s1 + $0x28] sm:$0xff] }
  0x13   :  { %v61_v13 = vld [vmem:[%s1206_s1 + $0x20] sm:$0xff]  ;;  %v63_v15 = vld [vmem:[%s1206_s1 + $0x30] sm:$0xff]  ;;  %v64_v16 = vld [vmem:[%s1206_s1 + $0x38] sm:$0xff] }
  0x14   :  { %842 = vmatprep.mubr.msk.f32.mxu0 %vm65_vm0, %v61_v13  ;;  %v438_v17 = vld [vmem:[%s1212_s7] sm:$0xff]  ;;  %v753_v13 = vshrl.u32 %v49_v3, 7 }
  0x15   :  { %554 = vperm.xlu1 %933, %v548_v20   ;;  %843 = vmatmul.mubr.msk.f32.gmra.mrb[4].mxu0 %vm65_vm0, %v62_v14 }
  0x16   :  { %361 = vperm.xlu0 %932, %v358_v19   ;;  %845 = vmatprep.mubr.msk.f32.mxu0 %vm65_vm0, %v63_v15 }
  0x19   :  { %564 = vperm.xlu1 %933, %v550_v22   ;;  %846 = vmatmul.mubr.msk.f32.gmra.mrb[6].mxu0 %vm65_vm0, %v64_v16  ;;  %v754_v16 = vsub.s32 0, %v753_v13 }
  0x1a   :  { %559 = vperm.xlu0 %932, %v549_v21   ;;  %875 = vmatprep.mubr.msk.f32.mxu0 %vm442_vm5, %v438_v17 }
  0x1d   :  { %590 = vperm.xlu1 %933, %v584_v24   ;;  %v440_v24 = vld [vmem:[%s1212_s7 + $0x10] sm:$0xff] }
  0x1e   :  { %569 = vperm.xlu0 %932, %v551_v23   ;;  %v439_v23 = vld [vmem:[%s1212_s7 + $0x8] sm:$0xff] }
  0x21   :  { %600 = vperm.xlu1 %933, %v586_v26   ;;  %v580_v26 = vld [vmem:[%s1214_s9] sm:$0xff] }
  0x22   :  { %595 = vperm.xlu0 %932, %v585_v25   ;;  %v441_v25 = vld [vmem:[%s1212_s7 + $0x18] sm:$0xff] }
  0x25   :  { %715 = vperm.xlu1 %933, %v709_v28  }
  0x26   :  { %605 = vperm.xlu0 %932, %v587_v27  }
  0x29   :  { %725 = vperm.xlu1 %933, %v711_v30  }
  0x2a   :  { %720 = vperm.xlu0 %932, %v710_v29  }
  0x2d   :  { %749 = vperm.xlu1 %933, %v746_v32  }
  0x2e   :  { %730 = vperm.xlu0 %932, %v712_v31  }
  0x84   :  { %v212_v35 = vpop.permute.xlu1 %211 }
  0x85   :  { %v202_v34 = vpop.permute.xlu0 %201 }
  0x88   :  { %v217_v42 = vpop.permute.xlu1 %216 }
  0x89   :  { %v207_v36 = vpop.permute.xlu0 %206 }
  0x8c   :  { %v243_v57 = vpop.permute.xlu1 %242 }
  0x8d   :  { %v238_v58 = vpop.permute.xlu0 %237 }
  0x90   :  { %v253_v0 = vpop.permute.xlu1 %252 }
  0x91   :  { %v248_v4 = vpop.permute.xlu0 %247 }
  0x94   :  { %v555_v28 = vpop.permute.xlu1 %554 }
  0x95   :  { %v362_v18 = vpop.permute.xlu0 %361 }
  0x99   :  { %v560_v27 = vpop.permute.xlu0 %559 }
  0xe0   :  { %v838_v37 = vpop.f32.mrb[0].mxu0 }
  0xe1   :  { %v220_v38 = vadd.f32 %v838_v37, %v207_v36  ;;  %v156_v39 = vpop.f32.mrb[1].mxu0  ;;  %v565_v37 = vpop.permute.xlu1 %564 }
  0xe2   :  { %v219_v40 = vadd.f32 %v202_v34, %v156_v39  ;;  %v570_v34 = vpop.permute.xlu0 %569 }
  0xe3   :  { %v224_v41 = vmax.f32 %v220_v38, 0.0 }
  0xe4   :  { %v223_v43 = vmax.f32 %v219_v40, 0.0  ;;  %v841_v44 = vpop.f32.mrb[2].mxu0 }
  0xe5   :  { %v222_v45 = vadd.f32 %v841_v44, %v217_v42  ;;  %v166_v46 = vpop.f32.mrb[3].mxu0 }
  0xe6   :  { %v221_v47 = vadd.f32 %v212_v35, %v166_v46  ;;  %v901_v48 = vpack.c.bf16 %v224_v41, %v223_v43  ;;  %v582_v46 = vld [vmem:[%s1214_s9 + $0x10] sm:$0xff] }
  0xe7   :  { %v226_v49 = vmax.f32 %v222_v45, 0.0  ;;  %v581_v45 = vld [vmem:[%s1214_s9 + $0x8] sm:$0xff] }
  0xe8   :  { %v225_v50 = vmax.f32 %v221_v47, 0.0  ;;  %902 = vmatprep.subr.bf16.mxu1 %v901_v48  ;;  %v583_v47 = vld [vmem:[%s1214_s9 + $0x18] sm:$0xff]  ;;  %s964_s9 = smov [#allocation3]  }
  0xe9   :  { %904 = vmatpush3.bf16.msra.mxu1 %v901_v48  ;;  %v591_v48 = vpop.permute.xlu1 %590  ;;  %s764_s22 = sshll.u32 %s964_s9, 4  ;;  %s765_s22 = int_to_ptr.vmem [resolvable:$true] %s764_s22 }
  0xea   :  { %v905_v51 = vpack.c.bf16 %v226_v49, %v225_v50  ;;  %v596_v49 = vpop.permute.xlu0 %595  ;;  %s936_s4 = scalar_lea.vmem %s765_s22, 16  ;;  %s940_s23 = scalar_lea.vmem %s765_s22, 32 }
  0xeb   :  { %p937_p0 = scmp.ne.s32.totalorder %s765_s22, %s936_s4  ;;  %p941_p1 = scmp.lt.s32.totalorder %s765_s22, %s765_s22 }
  0xec   :  { %906 = vmatprep.subr.bf16.mxu1 %v905_v51  ;;  %p942_p2 = scmp.lt.s32.totalorder %s940_s23, %s936_s4 }
  0xed   :  { %908 = vmatpush3.bf16.msra.mxu1 %v905_v51  ;;  %v601_v50 = vpop.permute.xlu1 %600 }
  0xee   :  { %909 = vmatprep.subr.bf16.mxu1 %v961_v55  ;;  %v606_v51 = vpop.permute.xlu0 %605  ;;  %p943_p3 = por %p942_p2, %p941_p1 }
  0xf0   :  { %857 = vmatmul.mubr.msk.f32.vlgmr.msra.gmra.mrb[0].mxu1 %vm255_vm3, %v228_v52  ;;  %p944_p4 = pnand %p943_p3, %p937_p0 }
  0xf1   :  { %859 = vmatprep.mubr.msk.f32.mxu1 %vm255_vm3, %v229_v53 }
  0xf4   :  { %860 = vmatmul.mubr.msk.f32.gmra.mrb[2].mxu1 %vm255_vm3, %v230_v54 }
  0xf5   :  { %870 = vmatprep.mubr.msk.f32.mxu1 %vm962_vm4, %v963_v56  ;;  %v716_v56 = vpop.permute.xlu1 %715 }
 0x1c3   :  { %v858_v59 = vpop.f32.mrb[0].mxu1 }
 0x1c4   :  { %v340_v60 = vadd.f32 %v858_v59, %v243_v57  ;;  %v334_v61 = vpop.f32.mrb[1].mxu1 }
 0x1c5   :  { %v335_v62 = vadd.f32 %v334_v61, %v238_v58  ;;  %v721_v58 = vpop.permute.xlu0 %720 }
 0x1c6   :  { %v354_v63 = vmax.f32 %v340_v60, 0.0 }
 0x1c7   :  { %v353_v1 = vmax.f32 %v335_v62, 0.0  ;;  %v861_v2 = vpop.f32.mrb[2].mxu1 }
 0x1c8   :  { %v350_v5 = vadd.f32 %v861_v2, %v253_v0  ;;  %v344_v6 = vpop.f32.mrb[3].mxu1 }
 0x1c9   :  { %v910_v7 = vpack.c.bf16 %v354_v63, %v353_v1  ;;  %v345_v8 = vadd.f32 %v344_v6, %v248_v4  ;;  %v726_v6 = vpop.permute.xlu1 %725 }
 0x1ca   :  { %v356_v9 = vmax.f32 %v350_v5, 0.0 }
 0x1cb   :  { %v355_v10 = vmax.f32 %v345_v8, 0.0  ;;  %911 = vmatpush3.bf16.msra.mxu1 %v910_v7  ;;  %v731_v8 = vpop.permute.xlu0 %730 }
 0x1cc   :  { %912 = vmatprep.subr.bf16.mxu1 %v961_v55 }
 0x1cd   :  { %v913_v11 = vpack.c.bf16 %v356_v9, %v355_v10 }
 0x1cf   :  { %914 = vmatpush3.bf16.msra.mxu1 %v913_v11 }
 0x1d2   :  { %871 = vmatmul.mubr.msk.f32.vlgmr.msra.gmra.mrb[4].mxu1 %vm255_vm3, %v357_v12 }
 0x1d3   :  { %889 = vmatprep.mubr.msk.f32.mxu1 %vm255_vm3, %v580_v26 }
 0x2a5   :  { %v433_v19 = vpop.f32.mrb[4].mxu1 }
 0x2a6   :  { %v434_v20 = vadd.f32 %v433_v19, %v362_v18  ;;  %v872_v21 = vpop.f32.mrb[5].mxu1  ;;  %v750_v18 = vpop.permute.xlu1 %749 }
 0x2a8   :  { %934 = vtanh.f32 %v434_v20  ;;  %v755_v20 = vrot.slane %v750_v18, %v754_v16 }
 0x2b2   :  { %v935_v22 = vpop.eup %934 }
 0x2b3   :  { %873 = vmatprep.subr.msk.mxu0 %vm455_vm6, %v935_v22 }
 0x2b4   :  { %874 = vmatpush3.msk.msra.mxu0 %vm455_vm6, %v935_v22 }
 0x2b5   :  { %876 = vmatmul.mubr.msk.f32.vlgmr.msra.gmra.mrb[4].mxu0 %vm442_vm5, %v439_v23 }
 0x2b6   :  { %878 = vmatprep.mubr.msk.f32.mxu0 %vm442_vm5, %v440_v24 }
 0x2b9   :  { %879 = vmatmul.mubr.msk.f32.gmra.mrb[6].mxu0 %vm442_vm5, %v441_v25 }
 0x388   :  { %v877_v29 = vpop.f32.mrb[4].mxu0 }
 0x389   :  { %v573_v30 = vadd.f32 %v877_v29, %v560_v27  ;;  %v525_v31 = vpop.f32.mrb[5].mxu0 }
 0x38a   :  { %v572_v32 = vadd.f32 %v555_v28, %v525_v31 }
 0x38b   :  { %v577_v33 = vmax.f32 %v573_v30, 0.0 }
 0x38c   :  { %v576_v35 = vmax.f32 %v572_v32, 0.0  ;;  %v880_v36 = vpop.f32.mrb[6].mxu0 }
 0x38d   :  { %v575_v38 = vadd.f32 %v880_v36, %v570_v34  ;;  %v535_v39 = vpop.f32.mrb[7].mxu0 }
 0x38e   :  { %v915_v40 = vpack.c.bf16 %v577_v33, %v576_v35  ;;  %v574_v41 = vadd.f32 %v565_v37, %v535_v39 }
 0x38f   :  { %v579_v42 = vmax.f32 %v575_v38, 0.0 }
 0x390   :  { %v578_v43 = vmax.f32 %v574_v41, 0.0  ;;  %916 = vmatprep.subr.bf16.mxu1 %v915_v40 }
 0x391   :  { %918 = vmatpush3.bf16.msra.mxu1 %v915_v40 }
 0x392   :  { %v919_v44 = vpack.c.bf16 %v579_v42, %v578_v43 }
 0x394   :  { %920 = vmatprep.subr.bf16.mxu1 %v919_v44 }
 0x395   :  { %922 = vmatpush3.bf16.msra.mxu1 %v919_v44 }
 0x398   :  { %890 = vmatmul.mubr.msk.f32.vlgmr.msra.gmra.mrb[6].mxu1 %vm255_vm3, %v581_v45 }
 0x399   :  { %892 = vmatprep.mubr.msk.f32.mxu1 %vm255_vm3, %v582_v46 }
 0x39c   :  { %893 = vmatmul.mubr.msk.f32.gmra.mrb[8].mxu1 %vm255_vm3, %v583_v47 }
 0x46b   :  { %v891_v52 = vpop.f32.mrb[6].mxu1 }
 0x46c   :  { %v692_v53 = vadd.f32 %v891_v52, %v596_v49  ;;  %v686_v54 = vpop.f32.mrb[7].mxu1 }
 0x46d   :  { %v687_v55 = vadd.f32 %v686_v54, %v591_v48 }
 0x46e   :  { %v706_v57 = vmax.f32 %v692_v53, 0.0 }
 0x46f   :  { %v705_v59 = vmax.f32 %v687_v55, 0.0  ;;  %v894_v60 = vpop.f32.mrb[8].mxu1 }
 0x470   :  { %v734_v61 = vmul.f32 %v721_v58, %v706_v57  ;;  %v702_v62 = vadd.f32 %v894_v60, %v606_v51  ;;  %v696_v63 = vpop.f32.mrb[9].mxu1 }
 0x471   :  { %v733_v0 = vmul.f32 %v716_v56, %v705_v59  ;;  %v697_v1 = vadd.f32 %v696_v63, %v601_v50 }
 0x472   :  { %v708_v4 = vmax.f32 %v702_v62, 0.0 }
 0x473   :  { %v737_v2 = vadd.f32 %v734_v61, %v733_v0  ;;  %v707_v5 = vmax.f32 %v697_v1, 0.0 }
 0x474   :  { %v736_v9 = vmul.f32 %v731_v8, %v708_v4 }
 0x475   :  { %v735_v7 = vmul.f32 %v726_v6, %v707_v5 }
 0x477   :  { %v738_v10 = vadd.f32 %v737_v2, %v735_v7 }
 0x479   :  { %v739_v11 = vadd.f32 %v738_v10, %v736_v9 }
 0x47b   :  { %v740_v12 = vrot.slane %v739_v11, 4 }
 0x47d   :  { %v741_v14 = vadd.f32 %v740_v12, %v739_v11 }
 0x47f   :  { %v742_v15 = vrot.slane %v741_v14, 2 }
 0x481   :  { %v743_v17 = vadd.f32 %v742_v15, %v741_v14 }
 0x483   :  { %v744_v19 = vrot.slane %v743_v17, 1 }
 0x485   :  { %v745_v21 = vadd.f32 %v744_v19, %v743_v17 }
 0x487   :  { %v756_v22 = vadd.f32 %v755_v20, %v745_v21 }
 0x489   :  { %757 = vst [vmem:[#allocation3] sm:$0x1] %v756_v22 }
 0x48a   :  { %947 = shalt.err (!%p944_p4)
}
 0x48b   :  { %s948_s6 = scalar_lea.hbm %s1218_s13, 16 }
 0x48c   :  { %p949_p5 = scmp.ne.s32.totalorder %s1218_s13, %s948_s6  ;;  %p952_p6 = scmp.lt.u32.totalorder %s948_s6, %s1218_s13 }
 0x48e   :  { %p954_p7 = pnand %p952_p6, %p949_p5 }
 0x490   :  { %957 = shalt.err (!%p954_p7)
}
 0x491   :  { %767 = dma.vmem_to_hbm [thread:$0]  %s765_s22, 16, %s1218_s13, [#allocation4]  }
 0x492   :  { %958 = dma.done.wait [#allocation4], 16  }
 0x493   :  { %959 = vsyncadd [#allocation4], 4294967280 }
 0x494   :  { %771 = vsyncpa [#allocation4], 1 }

</bundles_post_ra>
